<compile_context>
chip_gen: v7x
topology: tpu7x:2x2x1
jax: 0.10.0
libtpu: 0.0.40
codegen_flags: <defaults>
</compile_context>

<pallas_src>
import functools

import jax
import jax.numpy as jnp
from jax.experimental import pallas as pl
from jax.experimental.pallas import tpu as pltpu


def _largest_divisor_leq(n, cap):
    cap = int(max(1, min(n, cap)))
    for t in range(cap, 0, -1):
        if n % t == 0:
            return t
    return 1


def _spec(block_shape, index_map, buffers=None):
    """BlockSpec helper; silently falls back if pipeline_mode is unsupported."""
    if buffers is not None:
        try:
            return pl.BlockSpec(block_shape, index_map,
                                pipeline_mode=pl.Buffered(buffers))
        except Exception:
            pass
    return pl.BlockSpec(block_shape, index_map)


def _plane_kernel(coeff_ref, x_ref, out_ref, *, inv_d):
    """Full-plane path (small / unaligned W): TD depth-planes per step."""
    di = pl.program_id(1)
    nd = pl.num_programs(1)

    @pl.when(di == 0)
    def _init():
        out_ref[...] = jnp.zeros_like(out_ref)

    x = x_ref[...].astype(jnp.float32)          # (TD, H, W)
    sq = x * x
    coeff = coeff_ref[...]                      # (H, W), resident H/W face coeffs
    out_ref[...] += jnp.sum(sq * coeff[None, :, :])

    # D-faces: first plane of the first block / last plane of the last block.
    # (For D == 1 both fire on the same plane -> double-counted like torch.)
    @pl.when(di == 0)
    def _d_first():
        out_ref[...] += jnp.sum(sq[0]) * inv_d

    @pl.when(di == nd - 1)
    def _d_last():
        out_ref[...] += jnp.sum(sq[sq.shape[0] - 1]) * inv_d


def _faces_kernel(lcoef_ref, rcoef_ref, left_ref, right_ref, top_ref, bot_ref,
                  out_ref):
    """Surface-only path: boundary lane-tiles / row-strips, TD planes per step.
    Face coefficients (1/face_size at the boundary lane/row, 0 elsewhere) are
    precomputed in the wrapper, so each step is multiply + reduce only."""
    di = pl.program_id(1)

    @pl.when(di == 0)
    def _init():
        out_ref[...] = jnp.zeros_like(out_ref)

    left = left_ref[...].astype(jnp.float32)    # (TD, H, 128): col 0   = lane 0
    right = right_ref[...].astype(jnp.float32)  # (TD, H, 128): col W-1 = lane 127
    top = top_ref[...].astype(jnp.float32)      # (TD, HT, W):  row 0   = sublane 0
    bot = bot_ref[...].astype(jnp.float32)      # (TD, HT, W):  row H-1 = sublane HT-1

    lcoef = lcoef_ref[...]                      # (2, 1, 128)
    rcoef = rcoef_ref[...]                      # (2, HT, 1)
    cl, cr = lcoef[0:1], lcoef[1:2]
    ct, cb = rcoef[0:1], rcoef[1:2]

    out_ref[...] += (jnp.sum(left * left * cl) + jnp.sum(right * right * cr)
                     + jnp.sum(top * top * ct) + jnp.sum(bot * bot * cb))


def dirichlet_boundary_loss(output, bound_weight):
    """output: [N, C, D, H, W] array.  Returns the scalar f32 boundary loss."""
    n, c, d, h, w = output.shape
    del c
    inv_dface = 1.0 / float(n * h * w)   # planes [:,0, 0,:,:] and [:,0,-1,:,:]
    inv_hface = 1.0 / float(n * d * w)   # rows   [:,0,:, 0,:] and [:,0,:,-1,:]
    inv_wface = 1.0 / float(n * d * h)   # cols   [:,0,:,:, 0] and [:,0,:,:,-1]

    itemsize = jnp.dtype(output.dtype).itemsize
    ht = max(8, 32 // itemsize)          # strip rows: f32 -> 8, bf16 -> 16
    block_budget = 4 * 1024 * 1024       # bytes per pipeline buffer

    out_shape = jax.ShapeDtypeStruct((n, 1, 128), jnp.float32)
    out_spec = pl.BlockSpec((None, 1, 128), lambda ni, di: (ni, 0, 0))

    use_face_only = (w % 128 == 0 and w > 256 and h % ht == 0
                     and h >= 2 * ht and d >= 2)

    if use_face_only:
        slab_bytes = (2 * h * 128 + 2 * ht * w) * itemsize
        td = _largest_divisor_leq(d, max(1, block_budget // slab_bytes))
        nsteps = d // td
        bufs = 3 if nsteps >= 3 else None   # triple-buffer only when it can help

        lane = jnp.arange(128)
        lcoef = jnp.stack([jnp.where(lane == 0, inv_wface, 0.0),
                           jnp.where(lane == 127, inv_wface, 0.0)]
                          ).astype(jnp.float32).reshape(2, 1, 128)
        rows = jnp.arange(ht)
        rcoef = jnp.stack([jnp.where(rows == 0, inv_hface, 0.0),
                           jnp.where(rows == ht - 1, inv_hface, 0.0)]
                          ).astype(jnp.float32).reshape(2, ht, 1)

        kernel = _faces_kernel
        in_specs = [
            pl.BlockSpec((2, 1, 128), lambda ni, di: (0, 0, 0)),   # resident
            pl.BlockSpec((2, ht, 1), lambda ni, di: (0, 0, 0)),    # resident
            _spec((None, None, td, h, 128),
                  lambda ni, di: (ni, 0, di, 0, 0), bufs),
            _spec((None, None, td, h, 128),
                  lambda ni, di: (ni, 0, di, 0, w // 128 - 1), bufs),
            _spec((None, None, td, ht, w),
                  lambda ni, di: (ni, 0, di, 0, 0), bufs),
            _spec((None, None, td, ht, w),
                  lambda ni, di: (ni, 0, di, h // ht - 1, 0), bufs),
        ]
        args = (lcoef, rcoef, output, output, output, output)
    else:
        plane_bytes = max(1, h * w * itemsize)
        td = _largest_divisor_leq(d, max(1, block_budget // plane_bytes))

        row = jnp.arange(h)[:, None]
        col = jnp.arange(w)[None, :]
        # Sum of separate wheres so degenerate H==1 / W==1 faces still count twice.
        coeff2d = (jnp.where(row == 0, inv_hface, 0.0)
                   + jnp.where(row == h - 1, inv_hface, 0.0)
                   + jnp.where(col == 0, inv_wface, 0.0)
                   + jnp.where(col == w - 1, inv_wface, 0.0)).astype(jnp.float32)

        kernel = functools.partial(_plane_kernel, inv_d=inv_dface)
        in_specs = [
            pl.BlockSpec((h, w), lambda ni, di: (0, 0)),            # resident
            pl.BlockSpec((None, None, td, h, w),
                         lambda ni, di: (ni, 0, di, 0, 0)),
        ]
        args = (coeff2d, output)

    # TODO(synk): for N == 1 on v7x, split D into a second "parallel" grid axis
    # so both TensorCores are used.
    partials = pl.pallas_call(
        kernel,
        out_shape=out_shape,
        grid=(n, d // td),
        in_specs=in_specs,
        out_specs=out_spec,
        compiler_params=pltpu.CompilerParams(
            dimension_semantics=("parallel", "arbitrary"),
            vmem_limit_bytes=32 * 1024 * 1024),
    )(*args)

    total = jnp.sum(partials[:, 0, 0])
    if use_face_only:
        # D-faces: only two planes of HBM traffic -> plain XLA, keeps the
        # kernel's VMEM footprint limited to the tiny face windows.
        p0 = output[:, 0, 0, :, :].astype(jnp.float32)
        p1 = output[:, 0, d - 1, :, :].astype(jnp.float32)
        total = total + (jnp.sum(p0 * p0) + jnp.sum(p1 * p1)) * inv_dface

    return total * jnp.asarray(bound_weight, dtype=jnp.float32)


def _reference(output, bound_weight):
    vol = output[:, 0].astype(jnp.float32)
    faces = [vol[:, -1, :, :], vol[:, :, 0, :], vol[:, :, -1, :],
             vol[:, 0, :, :], vol[:, :, :, 0], vol[:, :, :, -1]]
    return sum(jnp.mean(f * f) for f in faces) * bound_weight


if __name__ == "__main__":
    key = jax.random.PRNGKey(0)
    k1, k2 = jax.random.split(key)

    # Small NCDHW input consistent with the module (full-plane path).
    x = jax.random.normal(k1, (2, 4, 16, 16, 16), dtype=jnp.float32)
    bound_weight = 0.5
    loss = jax.block_until_ready(dirichlet_boundary_loss(x, bound_weight))
    ref = _reference(x, bound_weight)
    assert jnp.allclose(loss, ref, rtol=2e-5, atol=1e-6), (loss, ref)

    # Wide-W input (surface-only path: boundary windows + wrapper D-faces).
    x2 = jax.random.normal(k2, (1, 2, 4, 16, 512), dtype=jnp.float32)
    loss2 = jax.block_until_ready(dirichlet_boundary_loss(x2, 1.5))
    ref2 = _reference(x2, 1.5)
    assert jnp.allclose(loss2, ref2, rtol=2e-5, atol=1e-6), (loss2, ref2)

    print("KERNEL_OK")
</pallas_src>

<mosaic_0001>
module attributes {stable_mosaic.version = 11 : i64} {
  func.func @_plane_kernel(%arg0: i32, %arg1: i32, %arg2: memref<16x16xf32, #tpu.memory_space<vmem>>, %arg3: memref<1x1x16x16x16xf32, #tpu.memory_space<vmem>>, %arg4: memref<1x1x128xf32, #tpu.memory_space<vmem>>) attributes {dimension_semantics = [#tpu.dimension_semantics<parallel>, #tpu.dimension_semantics<arbitrary>], iteration_bounds = array<i64: 2, 1>, scalar_prefetch = 0 : i64, scratch_operands = 0 : i64, tpu.core_type = #tpu.core_type<tc>, window_params = [{pipeline_mode = #tpu.pipeline_mode<synchronous>, transform_indices = @transform_0, window_bounds = array<i64: 16, 16>}, {transform_indices = @transform_1, window_bounds = array<i64: 1, 1, 16, 16, 16>}, {transform_indices = @transform_2, window_bounds = array<i64: 1, 1, 128>}]} {
    %c0_i32 = arith.constant 0 : i32
    %0 = arith.cmpi eq, %arg1, %c0_i32 : i32
    %1 = arith.extui %0 : i1 to i32
    %c0_i32_0 = arith.constant 0 : i32
    %2 = arith.cmpi ne, %1, %c0_i32_0 : i32
    scf.if %2 {
      %cst_17 = arith.constant 0.000000e+00 : f32
      %27 = vector.broadcast %cst_17 : f32 to vector<1x128xf32>
      %c0_18 = arith.constant 0 : index
      %c0_19 = arith.constant 0 : index
      %c0_20 = arith.constant 0 : index
      %28 = vector.load %arg4[%c0_18, %c0_19, %c0_20] : memref<1x1x128xf32, #tpu.memory_space<vmem>>, vector<1x1x128xf32>
      %29 = vector.shape_cast %28 : vector<1x1x128xf32> to vector<1x128xf32>
      %30 = vector.shape_cast %27 : vector<1x128xf32> to vector<1x1x128xf32>
      tpu.vector_store %arg4[%c0_18, %c0_19, %c0_20], %30 {strides = array<i32>} : memref<1x1x128xf32, #tpu.memory_space<vmem>>, vector<1x1x128xf32>,
    } else {
    }
    %c0 = arith.constant 0 : index
    %c0_1 = arith.constant 0 : index
    %c0_2 = arith.constant 0 : index
    %c0_3 = arith.constant 0 : index
    %c0_4 = arith.constant 0 : index
    %3 = vector.load %arg3[%c0, %c0_1, %c0_2, %c0_3, %c0_4] : memref<1x1x16x16x16xf32, #tpu.memory_space<vmem>>, vector<1x1x16x16x16xf32>
    %4 = vector.shape_cast %3 : vector<1x1x16x16x16xf32> to vector<16x16x16xf32>
    %5 = arith.mulf %4, %4 : vector<16x16x16xf32>
    %c0_5 = arith.constant 0 : index
    %c0_6 = arith.constant 0 : index
    %6 = vector.load %arg2[%c0_5, %c0_6] : memref<16x16xf32, #tpu.memory_space<vmem>>, vector<16x16xf32>
    %c0_7 = arith.constant 0 : index
    %c0_8 = arith.constant 0 : index
    %c0_9 = arith.constant 0 : index
    %7 = vector.load %arg4[%c0_7, %c0_8, %c0_9] : memref<1x1x128xf32, #tpu.memory_space<vmem>>, vector<1x1x128xf32>
    %8 = vector.shape_cast %7 : vector<1x1x128xf32> to vector<1x128xf32>
    %9 = vector.shape_cast %6 : vector<16x16xf32> to vector<1x16x16xf32>
    %10 = vector.broadcast %9 : vector<1x16x16xf32> to vector<16x16x16xf32>
    %11 = arith.mulf %5, %10 : vector<16x16x16xf32>
    %12 = vector.shape_cast %11 : vector<16x16x16xf32> to vector<1x16x16x16xf32>
    %cst = arith.constant dense<0.000000e+00> : vector<1xf32>
    %13 = vector.multi_reduction <add>, %12, %cst [1, 2, 3] : vector<1x16x16x16xf32> to vector<1xf32>
    %14 = vector.shape_cast %13 : vector<1xf32> to vector<1x1x1x1xf32>
    %15 = vector.extract %14[0, 0, 0, 0] : f32 from vector<1x1x1x1xf32>
    %16 = vector.broadcast %15 : f32 to vector<1x128xf32>
    %17 = arith.addf %8, %16 : vector<1x128xf32>
    %c0_10 = arith.constant 0 : index
    %c0_11 = arith.constant 0 : index
    %c0_12 = arith.constant 0 : index
    %18 = vector.load %arg4[%c0_10, %c0_11, %c0_12] : memref<1x1x128xf32, #tpu.memory_space<vmem>>, vector<1x1x128xf32>
    %19 = vector.shape_cast %18 : vector<1x1x128xf32> to vector<1x128xf32>
    %20 = vector.shape_cast %17 : vector<1x128xf32> to vector<1x1x128xf32>
    tpu.vector_store %arg4[%c0_10, %c0_11, %c0_12], %20 {strides = array<i32>} : memref<1x1x128xf32, #tpu.memory_space<vmem>>, vector<1x1x128xf32>,
    %c0_i32_13 = arith.constant 0 : i32
    %21 = arith.cmpi eq, %arg1, %c0_i32_13 : i32
    %22 = arith.extui %21 : i1 to i32
    %c0_i32_14 = arith.constant 0 : i32
    %23 = arith.cmpi ne, %22, %c0_i32_14 : i32
    scf.if %23 {
      %c0_17 = arith.constant 0 : index
      %c0_18 = arith.constant 0 : index
      %c0_19 = arith.constant 0 : index
      %27 = vector.load %arg4[%c0_17, %c0_18, %c0_19] : memref<1x1x128xf32, #tpu.memory_space<vmem>>, vector<1x1x128xf32>
      %28 = vector.shape_cast %27 : vector<1x1x128xf32> to vector<1x128xf32>
      %29 = vector.extract_strided_slice %5 {offsets = [0, 0, 0], sizes = [1, 16, 16], strides = [1, 1, 1]} : vector<16x16x16xf32> to vector<1x16x16xf32>
      %30 = vector.shape_cast %29 : vector<1x16x16xf32> to vector<16x16xf32>
      %31 = vector.shape_cast %30 : vector<16x16xf32> to vector<1x16x16xf32>
      %cst_20 = arith.constant dense<0.000000e+00> : vector<1xf32>
      %32 = vector.multi_reduction <add>, %31, %cst_20 [1, 2] : vector<1x16x16xf32> to vector<1xf32>
      %33 = vector.shape_cast %32 : vector<1xf32> to vector<1x1x1xf32>
      %34 = vector.extract %33[0, 0, 0] : f32 from vector<1x1x1xf32>
      %cst_21 = arith.constant 0.001953125 : f32
      %35 = arith.mulf %34, %cst_21 : f32
      %36 = vector.broadcast %35 : f32 to vector<1x128xf32>
      %37 = arith.addf %28, %36 : vector<1x128xf32>
      %c0_22 = arith.constant 0 : index
      %c0_23 = arith.constant 0 : index
      %c0_24 = arith.constant 0 : index
      %38 = vector.load %arg4[%c0_22, %c0_23, %c0_24] : memref<1x1x128xf32, #tpu.memory_space<vmem>>, vector<1x1x128xf32>
      %39 = vector.shape_cast %38 : vector<1x1x128xf32> to vector<1x128xf32>
      %40 = vector.shape_cast %37 : vector<1x128xf32> to vector<1x1x128xf32>
      tpu.vector_store %arg4[%c0_22, %c0_23, %c0_24], %40 {strides = array<i32>} : memref<1x1x128xf32, #tpu.memory_space<vmem>>, vector<1x1x128xf32>,
    } else {
    }
    %c0_i32_15 = arith.constant 0 : i32
    %24 = arith.cmpi eq, %arg1, %c0_i32_15 : i32
    %25 = arith.extui %24 : i1 to i32
    %c0_i32_16 = arith.constant 0 : i32
    %26 = arith.cmpi ne, %25, %c0_i32_16 : i32
    scf.if %26 {
      %c0_17 = arith.constant 0 : index
      %c0_18 = arith.constant 0 : index
      %c0_19 = arith.constant 0 : index
      %27 = vector.load %arg4[%c0_17, %c0_18, %c0_19] : memref<1x1x128xf32, #tpu.memory_space<vmem>>, vector<1x1x128xf32>
      %28 = vector.shape_cast %27 : vector<1x1x128xf32> to vector<1x128xf32>
      %29 = vector.extract_strided_slice %5 {offsets = [15, 0, 0], sizes = [1, 16, 16], strides = [1, 1, 1]} : vector<16x16x16xf32> to vector<1x16x16xf32>
      %30 = vector.shape_cast %29 : vector<1x16x16xf32> to vector<16x16xf32>
      %31 = vector.shape_cast %30 : vector<16x16xf32> to vector<1x16x16xf32>
      %cst_20 = arith.constant dense<0.000000e+00> : vector<1xf32>
      %32 = vector.multi_reduction <add>, %31, %cst_20 [1, 2] : vector<1x16x16xf32> to vector<1xf32>
      %33 = vector.shape_cast %32 : vector<1xf32> to vector<1x1x1xf32>
      %34 = vector.extract %33[0, 0, 0] : f32 from vector<1x1x1xf32>
      %cst_21 = arith.constant 0.001953125 : f32
      %35 = arith.mulf %34, %cst_21 : f32
      %36 = vector.broadcast %35 : f32 to vector<1x128xf32>
      %37 = arith.addf %28, %36 : vector<1x128xf32>
      %c0_22 = arith.constant 0 : index
      %c0_23 = arith.constant 0 : index
      %c0_24 = arith.constant 0 : index
      %38 = vector.load %arg4[%c0_22, %c0_23, %c0_24] : memref<1x1x128xf32, #tpu.memory_space<vmem>>, vector<1x1x128xf32>
      %39 = vector.shape_cast %38 : vector<1x1x128xf32> to vector<1x128xf32>
      %40 = vector.shape_cast %37 : vector<1x128xf32> to vector<1x1x128xf32>
      tpu.vector_store %arg4[%c0_22, %c0_23, %c0_24], %40 {strides = array<i32>} : memref<1x1x128xf32, #tpu.memory_space<vmem>>, vector<1x1x128xf32>,
    } else {
    }
    return
  }
  func.func @transform_0(%arg0: i32, %arg1: i32) -> (i32, i32) {
    %c0_i32 = arith.constant 0 : i32
    %c0_i32_0 = arith.constant 0 : i32
    %c0_i32_1 = arith.constant 0 : i32
    return %c0_i32, %c0_i32_0 : i32, i32
  }
  func.func @transform_1(%arg0: i32, %arg1: i32) -> (i32, i32, i32, i32, i32) {
    %c0_i32 = arith.constant 0 : i32
    %c0_i32_0 = arith.constant 0 : i32
    %c0_i32_1 = arith.constant 0 : i32
    %c0_i32_2 = arith.constant 0 : i32
    return %arg0, %c0_i32, %arg1, %c0_i32_0, %c0_i32_1 : i32, i32, i32, i32, i32
  }
  func.func @transform_2(%arg0: i32, %arg1: i32) -> (i32, i32, i32) {
    %c0_i32 = arith.constant 0 : i32
    %c0_i32_0 = arith.constant 0 : i32
    %c0_i32_1 = arith.constant 0 : i32
    return %arg0, %c0_i32, %c0_i32_0 : i32, i32, i32
  }
}

</mosaic_0001>

<bundles_post_ra>
// kernel: tpu_custom_call.1
= control target key start
LH: loop header
LB: loop body
LE: loop exit
PB: predicated region body
PF: predicated region fallthrough
CT: control target
= control target key end

     0   :  { %7 = vsyncpa [#allocation3], 0  ;;  %s1128_s0 = inlined_call_operand.hbm [shape: f32[16,16], index: 0, kind: input, shape index: {}]   ;;  %s1129_s1 = inlined_call_operand.hbm [shape: f32[2,4,16,16,16], index: 1, kind: input, shape index: {}]   ;;  %s1130_s2 = inlined_call_operand.hbm [shape: f32[2,1,128], index: 2, kind: output, shape index: {}]  }
   0x1   :  { %8 = vsyncpa [#allocation6], 0 }
   0x2   :  { %10 = vsyncpa [#allocation6 + $0x1], 0 }
   0x3   :  { %11 = vsyncpa [#allocation4], 0 }
   0x4   :  { %13 = vsyncpa [#allocation4 + $0x1], 0  ;;  %s777_s9 = smov 0   ;;  %s779_s10 = smov 0  }
   0x5   :  { %s781_s11 = smov 0   ;;  %s783_s12 = smov 0  }
   0x6   :  { %s785_s13 = smov 0   ;;  %s787_s14 = smov 0  }
   0x7 LB: > { %s513_s15 = sadd.s32 4294967295, %s754_s14   ;;  %s514_s16 = sadd.s32 4294967294, %s754_s14   ;;  %s754_s14 = sphi %s787_s14, %s19_s14   ;;  %s750_s13 = sphi %s785_s13, %s1154_s13   ;;  %s746_s12 = sphi %s783_s12, %s1153_s12   ;;  %s742_s11 = sphi %s781_s11, %s1152_s11   ;;  %s738_s10 = sphi %s779_s10, %s1151_s10   ;;  %s734_s9 = sphi %s777_s9, %s1150_s9  }
   0x8   : > { %p74_p0 = scmp.ne.s32.totalorder %s738_s10, %s734_s9  ;;  %p811_p1 = scmp.eq.s32.totalorder %s513_s15, 0 }
   0x9   : > { %p815_p2 = scmp.eq.s32.totalorder %s513_s15, 1  ;;  %p104_p3 = scmp.eq.s32.totalorder %s514_s16, 1 }
   0xa   : > { %s1135_s17 = scalar_select %p811_p1, 1, 0 }
   0xb   : > { %s1136_s18 = scalar_select %p815_p2, 1, 0 }
   0xc   : > { %p821_p4 = por %p811_p1, %p74_p0  ;;  %p515_p5 = scmp.ge.s32.totalorder %s754_s14, 1 }
   0xd   : > { %p826_p6 = por %p104_p3, %p74_p0  ;;  %p111_p7 = scmp.lt.s32.totalorder %s754_s14, 3 }
   0xe   : > { %s1137_s19 = scalar_select %p821_p4, 1, 0 }
   0xf   : > { %s1138_s20 = scalar_select %p826_p6, 1, 0 }
  0x10   : > { %p831_p8 = pnand %p515_p5, %p111_p7  ;;  %s756_s22 = smov [#allocation2]  }
  0x11   : > { %s123_s23 = sshll.u32 %s756_s22, 4  ;;  %s31_s25 = sadd.s32 1, %s750_s13  ;;  %s124_s23 = int_to_ptr.vmem [resolvable:$true] %s123_s23 }
  0x12   : > { %s1139_s21 = scalar_select %p831_p8, 1, 0 }
  0x13   : > { %p542_p9 = pneg %p831_p8  ;;  %s610_s28 = scalar_lea.hbm %s1128_s0, 256 }
  0x14   : > { %p611_p12 = scmp.ne.s32.totalorder %s1128_s0, %s610_s28  ;;  %p617_p5 = scmp.lt.u32.totalorder %s610_s28, %s1128_s0 }
  0x15   : > { %p840_p11 = pnand %p542_p9, %p811_p1 }
  0x17   : > { %p612_p13 = pneg %p840_p11 }
  0x19   : > { %p613_p0 = pnand %p612_p13, %p611_p12 }
  0x1b   : > { %p614_p3 = pneg %p613_p0 }
  0x1d   : > { %p619_p7 = pnand %p617_p5, %p614_p3 }
  0x1f   : > { %622 = shalt.err (!%p619_p7)
}
  0x20   : > { %s623_s5 = scalar_lea.vmem %s124_s23, 256  ;;  %p631_p4 = scmp.lt.s32.totalorder %s124_s23, %s124_s23 }
  0x21   : > { %p624_p9 = scmp.ne.s32.totalorder %s124_s23, %s623_s5  ;;  %p632_p1 = scmp.lt.s32.totalorder %s623_s5, %s623_s5 }
  0x23   : > { %p626_p10 = pnand %p624_p9, %p612_p13  ;;  %p633_p8 = por %p632_p1, %p631_p4 }
  0x25   : > { %p627_p6 = pneg %p626_p10 }
  0x27   : > { %p634_p2 = pnand %p633_p8, %p627_p6 }
  0x29   : > { %637 = shalt.err (!%p634_p2)
}
  0x2a   : > { %s757_s6 = smov 128   ;;  %s758_s7 = smov 8  }
  0x2b   : > { %545 = dma.hbm_to_vmem [thread:$0]  (!%p840_p11), %s1128_s0, 256, %s124_s23, [#allocation3], %s757_s6, %s757_s6, %s758_s7  }
  0x2c   : > { %p33_p1 = scmp.ge.s32.totalorder %s31_s25, 2  ;;  %s61_s16 = sadd.s32 1, %s742_s11 }
  0x2d   : > { %p68_p2 = scmp.ne.s32.totalorder %s742_s11, %s738_s10  ;;  %p69_p4 = scmp.eq.s32.totalorder %s754_s14, 0 }
  0x2e   : > { %s1156_s25 = smov (%p33_p1, %s31_s25), 0  ;;  %p1142_p8 = scmp.ne.s32.totalorder %s1136_s18, 0 }
  0x2f   : > { %p870_p6 = por %p69_p4, %p68_p2  ;;  %s56_s26 = ssub.s32 %s750_s13, %s1156_s25 }
  0x30   : > { %p876_p10 = por %p1142_p8, %p68_p2  ;;  %p555_p12 = scmp.lt.s32.totalorder %s754_s14, 2 }
  0x31   : > { %p59_p11 = scmp.eq.s32.totalorder %s56_s26, 0  ;;  %s137_s23 = sand.u32 1, %s742_s11  }
  0x32   : > { %s518_s27 = sshll.u32 %s137_s23, 8  ;;  %s527_s29 = sshll.u32 %s750_s13, 14 }
  0x33   : > { %s885_s28 = scalar_select %p59_p11, %s742_s11, %s61_s16  }
  0x34   : > { %s891_s4 = scalar_lea.hbm %s1129_s1, %s527_s29  ;;  %s141_s18 = scalar_lea.vmem [#allocation5], %s518_s27 }
  0x35   : > { %s151_s5 = sshll.u32 %s141_s18, 4  ;;  %p897_p13 = pnand %p555_p12, %p870_p6  ;;  %s893_s5 = int_to_ptr.vmem [resolvable:$true] %s151_s5 }
  0x36   : > { %s901_s15 = scalar_lea.sflag [#allocation6], %s137_s23  ;;  %s638_s16 = scalar_lea.hbm %s891_s4, 4096 }
  0x37   : > { %p639_p0 = scmp.ne.s32.totalorder %s891_s4, %s638_s16  ;;  %p640_p3 = pneg %p897_p13 }
  0x38   : > { %s643_s22 = scalar_lea.hbm %s1129_s1, 32768  ;;  %p644_p9 = scmp.lt.u32.totalorder %s891_s4, %s1129_s1 }
  0x39   : > { %p641_p5 = pnand %p640_p3, %p639_p0  ;;  %p645_p1 = scmp.lt.u32.totalorder %s643_s22, %s638_s16 }
  0x3a   : > { %p647_p4 = scmp.lt.u32.totalorder %s638_s16, %s891_s4 }
  0x3b   : > { %p642_p7 = pneg %p641_p5  ;;  %p646_p2 = por %p645_p1, %p644_p9 }
  0x3d   : > { %p648_p6 = por %p647_p4, %p646_p2 }
  0x3f   : > { %p649_p8 = pnand %p648_p6, %p642_p7 }
  0x41   : > { %652 = shalt.err (!%p649_p8)
}
  0x42   : > { %s653_s23 = scalar_lea.vmem %s893_s5, 4096  ;;  %s759_s3 = smov [#allocation5]  }
  0x43   : > { %p654_p12 = scmp.ne.s32.totalorder %s893_s5, %s653_s23  ;;  %s658_s18 = sshll.u32 %s759_s3, 4  ;;  %s659_s18 = int_to_ptr.vmem [resolvable:$false] %s658_s18 }
  0x44   : > { %s660_s26 = scalar_lea.vmem %s659_s18, 8192  ;;  %p661_p5 = scmp.lt.s32.totalorder %s893_s5, %s659_s18 }
  0x45   : > { %p656_p11 = pnand %p654_p12, %p640_p3  ;;  %p662_p9 = scmp.lt.s32.totalorder %s660_s26, %s653_s23 }
  0x47   : > { %p657_p0 = pneg %p656_p11  ;;  %p663_p1 = por %p662_p9, %p661_p5 }
  0x49   : > { %p664_p2 = pnand %p663_p1, %p657_p0 }
  0x4b   : > { %667 = shalt.err (!%p664_p2)
}
  0x4c   : > { %549 = dma.hbm_to_vmem [thread:$0]  (!%p897_p13), %s891_s4, 4096, %s893_s5, %s901_s15, %s757_s6, %s757_s6, %s758_s7  }
  0x4d   : > { %p1145_p3 = scmp.ne.s32.totalorder %s1139_s21, 0 }
  0x4e   : > { %p1146_p7 = scmp.ne.s32.totalorder (!%p1145_p3), %s1135_s17, 0 }
  0x4f   : > { %163 = sbr.rel (%p1145_p3) target bundleno = 400 (0x190), region = 28 }
  0x56   : > { %721 = dma.done.wait (%p1146_p7), [#allocation3], 256  }
  0x57   : > { %723 = vsyncadd (%p1146_p7), [#allocation3], 4294967040  ;;  %s939_s16 = sand.u32 1, %s738_s10   ;;  %p1147_p13 = scmp.ne.s32.totalorder %s1137_s19, 0 }
  0x58   : > { %s523_s8 = sshll.u32 %s939_s16, 8  ;;  %s170_s27 = scalar_lea.sflag [#allocation6], %s939_s16 }
  0x59   : > { %s943_s22 = scalar_lea.vmem [#allocation5], %s523_s8 }
  0x5a   : > { %725 = dma.done.wait (%p1147_p13), %s170_s27, 4096  }
  0x5b   : > { %727 = vsyncadd (%p1147_p13), %s170_s27, 4294963200  ;;  %v199_v0 = vld [vmem:[%s943_s22] sm:$0xff]  ;;  %v200_v1 = vld [vmem:[%s943_s22 + $0x8] sm:$0xff]  ;;  %vm298_vm0 = vcmask 130048   ;;  %s1065_s17 = scalar_lea.vmem [#allocation7], %s939_s16  ;;  %s524_s5 = sshll.u32 %s746_s12, 4 }
  0x5c   : > { %v231_v2 = vmul.f32 %v199_v0, %v199_v0  ;;  %v232_v3 = vmul.f32 %v200_v1, %v200_v1  ;;  %v201_v7 = vld [vmem:[%s943_s22 + $0x10] sm:$0xff]  ;;  %v202_v8 = vld [vmem:[%s943_s22 + $0x18] sm:$0xff]  ;;  %v203_v9 = vld [vmem:[%s943_s22 + $0x20] sm:$0xff]  ;;  %s424_s15 = sshll.u32 %s1065_s17, 4  ;;  %s1078_s23 = scalar_lea.hbm %s1130_s2, %s524_s5  ;;  %s1080_s15 = int_to_ptr.vmem [resolvable:$true] %s424_s15 }
  0x5d   : > { %v233_v10 = vmul.f32 %v201_v7, %v201_v7  ;;  %v958_v11 = vld [vmem:[#allocation2] sm:$0xff]  ;;  %v960_v12 = vld [vmem:[#allocation2 + $0x8] sm:$0xff]  ;;  %v234_v13 = vmul.f32 %v202_v8, %v202_v8  ;;  %v204_v14 = vld [vmem:[%s943_s22 + $0x28] sm:$0xff]  ;;  %v235_v15 = vmul.f32 %v203_v9, %v203_v9  ;;  %s412_s3 = scalar_lea.sflag [#allocation4], %s939_s16  ;;  %s668_s18 = scalar_lea.vmem %s1080_s15, 16 }
  0x5e   : > { %v378_v4 = vsel %vm298_vm0, %v231_v2, 0.0  ;;  %v379_v5 = vsel %vm298_vm0, %v232_v3, 0.0  ;;  %v266_v16 = vmul.f32 %v958_v11, %v231_v2  ;;  %v267_v17 = vmul.f32 %v960_v12, %v232_v3  ;;  %v205_v18 = vld [vmem:[%s943_s22 + $0x30] sm:$0xff]  ;;  %v206_v22 = vld [vmem:[%s943_s22 + $0x38] sm:$0xff]  ;;  %v207_v27 = vld [vmem:[%s943_s22 + $0x40] sm:$0xff]  ;;  %p669_p4 = scmp.ne.s32.totalorder %s1080_s15, %s668_s18  ;;  %s761_s12 = smov [#allocation7]  }
  0x5f   : > { %v953_v6 = vadd.f32 %v379_v5, %v378_v4  ;;  %v268_v19 = vmul.f32 %v958_v11, %v233_v10  ;;  %v236_v20 = vmul.f32 %v204_v14, %v204_v14  ;;  %v269_v21 = vmul.f32 %v960_v12, %v234_v13  ;;  %v208_v33 = vld [vmem:[%s943_s22 + $0x48] sm:$0xff]  ;;  %v229_v35 = vld [vmem:[%s943_s22 + $0xf0] sm:$0xff]  ;;  %v230_v40 = vld [vmem:[%s943_s22 + $0xf8] sm:$0xff]  ;;  %s672_s26 = sshll.u32 %s761_s12, 4  ;;  %s673_s26 = int_to_ptr.vmem [resolvable:$false] %s672_s26 }
  0x60   : > { %v237_v23 = vmul.f32 %v205_v18, %v205_v18  ;;  %v270_v24 = vmul.f32 %v958_v11, %v235_v15  ;;  %v299_v25 = vsel %vm298_vm0, %v266_v16, 0.0  ;;  %v300_v26 = vsel %vm298_vm0, %v267_v17, 0.0  ;;  %v209_v39 = vld [vmem:[%s943_s22 + $0x50] sm:$0xff]  ;;  %v210_v45 = vld [vmem:[%s943_s22 + $0x58] sm:$0xff]  ;;  %v211_v52 = vld [vmem:[%s943_s22 + $0x60] sm:$0xff]  ;;  %p670_p6 = pnand %p669_p4, %p876_p10  ;;  %s674_s8 = scalar_lea.vmem %s673_s26, 32 }
  0x61   : > { %v301_v28 = vadd.f32 %v300_v26, %v299_v25  ;;  %v302_v29 = vsel %vm298_vm0, %v268_v19, 0.0  ;;  %v238_v30 = vmul.f32 %v206_v22, %v206_v22  ;;  %v271_v31 = vmul.f32 %v960_v12, %v236_v20  ;;  %v212_v59 = vld [vmem:[%s943_s22 + $0x68] sm:$0xff]  ;;  %v213_v1 = vld [vmem:[%s943_s22 + $0x70] sm:$0xff]  ;;  %v214_v7 = vld [vmem:[%s943_s22 + $0x78] sm:$0xff]  ;;  %p675_p12 = scmp.lt.s32.totalorder %s1080_s15, %s673_s26  ;;  %p676_p11 = scmp.lt.s32.totalorder %s674_s8, %s668_s18 }
  0x62   : > { %v304_v32 = vsel %vm298_vm0, %v269_v21, 0.0  ;;  %v239_v36 = vmul.f32 %v207_v27, %v207_v27  ;;  %v272_v37 = vmul.f32 %v958_v11, %v237_v23  ;;  %v306_v38 = vsel %vm298_vm0, %v270_v24, 0.0  ;;  %v215_v14 = vld [vmem:[%s943_s22 + $0x80] sm:$0xff]  ;;  %v216_v19 = vld [vmem:[%s943_s22 + $0x88] sm:$0xff]  ;;  %v217_v24 = vld [vmem:[%s943_s22 + $0x90] sm:$0xff]  ;;  %p671_p8 = pneg %p670_p6 }
  0x63   : > { %v303_v34 = vadd.f32 %v302_v29, %v301_v28  ;;  %v240_v42 = vmul.f32 %v208_v33, %v208_v33  ;;  %v273_v43 = vmul.f32 %v960_v12, %v238_v30  ;;  %v308_v44 = vsel %vm298_vm0, %v271_v31, 0.0  ;;  %v218_v29 = vld [vmem:[%s943_s22 + $0x98] sm:$0xff]  ;;  %p677_p0 = por %p676_p11, %p675_p12 }
  0x64   : > { %v985_v46 = vmul.f32 %v229_v35, %v229_v35  ;;  %v241_v48 = vmul.f32 %v209_v39, %v209_v39  ;;  %v987_v49 = vmul.f32 %v230_v40, %v230_v40  ;;  %v274_v50 = vmul.f32 %v958_v11, %v239_v36  ;;  %v220_v39 = vld [vmem:[%s943_s22 + $0xa8] sm:$0xff] }
  0x65   : > { %v305_v41 = vadd.f32 %v304_v32, %v303_v34  ;;  %v310_v51 = vsel %vm298_vm0, %v272_v37, 0.0  ;;  %v242_v55 = vmul.f32 %v210_v45, %v210_v45  ;;  %v275_v56 = vmul.f32 %v960_v12, %v240_v42  ;;  %v219_v34 = vld [vmem:[%s943_s22 + $0xa0] sm:$0xff]  ;;  %p678_p5 = pnand %p677_p0, %p671_p8 }
  0x66   : > { %v395_v54 = vsel %vm298_vm0, %v985_v46, 0.0  ;;  %v312_v57 = vsel %vm298_vm0, %v273_v43, 0.0  ;;  %v396_v58 = vsel %vm298_vm0, %v987_v49, 0.0  ;;  %v243_v62 = vmul.f32 %v211_v52, %v211_v52 }
  0x67   : > { %v307_v47 = vadd.f32 %v306_v38, %v305_v41  ;;  %v397_v61 = vadd.f32 %v396_v58, %v395_v54  ;;  %v276_v63 = vmul.f32 %v958_v11, %v241_v48  ;;  %v314_v0 = vsel %vm298_vm0, %v274_v50, 0.0 }
  0x68   : > { %v244_v3 = vmul.f32 %v212_v59, %v212_v59  ;;  %v277_v4 = vmul.f32 %v960_v12, %v242_v55  ;;  %v316_v5 = vsel %vm298_vm0, %v275_v56, 0.0  ;;  %v245_v9 = vmul.f32 %v213_v1, %v213_v1  ;;  %v223_v56 = vld [vmem:[%s943_s22 + $0xc0] sm:$0xff] }
  0x69   : > { %v309_v53 = vadd.f32 %v308_v44, %v307_v47  ;;  %398 = vadd.xlane.f32.xlu1 %v397_v61  ;;  %v278_v10 = vmul.f32 %v958_v11, %v243_v62  ;;  %v318_v13 = vsel %vm298_vm0, %v276_v63, 0.0  ;;  %v246_v16 = vmul.f32 %v214_v7, %v214_v7  ;;  %v221_v44 = vld [vmem:[%s943_s22 + $0xb0] sm:$0xff]  ;;  %v224_v61 = vld [vmem:[%s943_s22 + $0xc8] sm:$0xff] }
  0x6a   : > { %v279_v17 = vmul.f32 %v960_v12, %v244_v3  ;;  %v320_v18 = vsel %vm298_vm0, %v277_v4, 0.0  ;;  %v247_v21 = vmul.f32 %v215_v14, %v215_v14  ;;  %v280_v22 = vmul.f32 %v958_v11, %v245_v9 }
  0x6b   : > { %v311_v60 = vadd.f32 %v310_v51, %v309_v53  ;;  %v322_v23 = vsel %vm298_vm0, %v278_v10, 0.0  ;;  %v248_v26 = vmul.f32 %v216_v19, %v216_v19  ;;  %v281_v27 = vmul.f32 %v960_v12, %v246_v16  ;;  %v222_v51 = vld [vmem:[%s943_s22 + $0xb8] sm:$0xff] }
  0x6c   : > { %v324_v28 = vsel %vm298_vm0, %v279_v17, 0.0  ;;  %v249_v31 = vmul.f32 %v217_v24, %v217_v24  ;;  %v282_v32 = vmul.f32 %v958_v11, %v247_v21  ;;  %v326_v33 = vsel %vm298_vm0, %v280_v22, 0.0 }
  0x6d   : > { %v313_v2 = vadd.f32 %v312_v57, %v311_v60  ;;  %v250_v36 = vmul.f32 %v218_v29, %v218_v29  ;;  %v283_v37 = vmul.f32 %v960_v12, %v248_v26  ;;  %v328_v38 = vsel %vm298_vm0, %v281_v27, 0.0 }
  0x6e   : > { %v251_v41 = vmul.f32 %v219_v34, %v219_v34  ;;  %v284_v42 = vmul.f32 %v958_v11, %v249_v31  ;;  %v330_v43 = vsel %vm298_vm0, %v282_v32, 0.0  ;;  %v252_v47 = vmul.f32 %v220_v39, %v220_v39 }
  0x6f   : > { %v315_v8 = vadd.f32 %v314_v0, %v313_v2  ;;  %v285_v48 = vmul.f32 %v960_v12, %v250_v36  ;;  %v332_v50 = vsel %vm298_vm0, %v283_v37, 0.0  ;;  %v253_v53 = vmul.f32 %v221_v44, %v221_v44  ;;  %v225_v2 = vld [vmem:[%s943_s22 + $0xd0] sm:$0xff] }
  0x70   : > { %v286_v54 = vmul.f32 %v958_v11, %v251_v41  ;;  %v334_v55 = vsel %vm298_vm0, %v284_v42, 0.0  ;;  %v254_v58 = vmul.f32 %v222_v51, %v222_v51  ;;  %v287_v59 = vmul.f32 %v960_v12, %v252_v47 }
  0x71   : > { %v317_v15 = vadd.f32 %v316_v5, %v315_v8  ;;  %v336_v60 = vsel %vm298_vm0, %v285_v48, 0.0  ;;  %v255_v63 = vmul.f32 %v223_v56, %v223_v56  ;;  %v288_v0 = vmul.f32 %v958_v11, %v253_v53  ;;  %v226_v8 = vld [vmem:[%s943_s22 + $0xd8] sm:$0xff] }
  0x72   : > { %v338_v1 = vsel %vm298_vm0, %v286_v54, 0.0  ;;  %v256_v4 = vmul.f32 %v224_v61, %v224_v61  ;;  %v289_v5 = vmul.f32 %v960_v12, %v254_v58  ;;  %v340_v7 = vsel %vm298_vm0, %v287_v59, 0.0 }
  0x73   : > { %v319_v20 = vadd.f32 %v318_v13, %v317_v15  ;;  %v257_v10 = vmul.f32 %v225_v2, %v225_v2  ;;  %v290_v13 = vmul.f32 %v958_v11, %v255_v63  ;;  %v342_v14 = vsel %vm298_vm0, %v288_v0, 0.0  ;;  %v227_v15 = vld [vmem:[%s943_s22 + $0xe0] sm:$0xff] }
  0x74   : > { %v258_v17 = vmul.f32 %v226_v8, %v226_v8  ;;  %v344_v19 = vsel %vm298_vm0, %v289_v5, 0.0  ;;  %v259_v22 = vmul.f32 %v227_v15, %v227_v15  ;;  %v296_v36 = vmul.f32 %v958_v11, %v985_v46 }
  0x75   : > { %v321_v25 = vadd.f32 %v320_v18, %v319_v20  ;;  %v291_v18 = vmul.f32 %v960_v12, %v256_v4  ;;  %v228_v20 = vld [vmem:[%s943_s22 + $0xe8] sm:$0xff]  ;;  %v346_v24 = vsel %vm298_vm0, %v290_v13, 0.0  ;;  %v297_v39 = vmul.f32 %v960_v12, %v987_v49 }
  0x76   : > { %v260_v26 = vmul.f32 %v228_v20, %v228_v20  ;;  %v293_v27 = vmul.f32 %v960_v12, %v258_v17  ;;  %v358_v42 = vsel %vm298_vm0, %v296_v36, 0.0 }
  0x77   : > { %v323_v30 = vadd.f32 %v322_v23, %v321_v25  ;;  %v292_v23 = vmul.f32 %v958_v11, %v257_v10  ;;  %v360_v44 = vsel %vm298_vm0, %v297_v39, 0.0 }
  0x78   : > { %v352_v34 = vsel %vm298_vm0, %v293_v27, 0.0 }
  0x79   : > { %v325_v35 = vadd.f32 %v324_v28, %v323_v30  ;;  %v348_v28 = vsel %vm298_vm0, %v291_v18, 0.0  ;;  %v294_v30 = vmul.f32 %v958_v11, %v259_v22  ;;  %v350_v31 = vsel %vm298_vm0, %v292_v23, 0.0 }
  0x7a   : > { %v760_v11 = vmov 0.0  }
  0x7b   : > { %v327_v40 = vadd.f32 %v326_v33, %v325_v35  ;;  %v295_v33 = vmul.f32 %v960_v12, %v260_v26  ;;  %v354_v37 = vsel %vm298_vm0, %v294_v30, 0.0  ;;  %198 = vst [vmem:[%s1065_s17] sm:$0x1] %v760_v11 }
  0x7d   : > { %v329_v45 = vadd.f32 %v328_v38, %v327_v40  ;;  %v356_v40 = vsel %vm298_vm0, %v295_v33, 0.0 }
  0x7f   : > { %v331_v52 = vadd.f32 %v330_v43, %v329_v45 }
  0x81   : > { %v333_v57 = vadd.f32 %v332_v50, %v331_v52 }
  0x82   : > { %v265_v2 = vld [vmem:[%s1065_s17] sm:$0x1] }
  0x83   : > { %v335_v62 = vadd.f32 %v334_v55, %v333_v57 }
  0x85   : > { %v337_v3 = vadd.f32 %v336_v60, %v335_v62 }
  0x87   : > { %v339_v9 = vadd.f32 %v338_v1, %v337_v3 }
  0x89   : > { %v341_v16 = vadd.f32 %v340_v7, %v339_v9 }
  0x8b   : > { %v343_v21 = vadd.f32 %v342_v14, %v341_v16 }
  0x8d   : > { %v345_v25 = vadd.f32 %v344_v19, %v343_v21 }
  0x8f   : > { %v347_v29 = vadd.f32 %v346_v24, %v345_v25 }
  0x91   : > { %v349_v32 = vadd.f32 %v348_v28, %v347_v29 }
  0x93   : > { %v351_v35 = vadd.f32 %v350_v31, %v349_v32 }
  0x95   : > { %v353_v38 = vadd.f32 %v352_v34, %v351_v35 }
  0x97   : > { %v355_v41 = vadd.f32 %v354_v37, %v353_v38 }
  0x99   : > { %v357_v43 = vadd.f32 %v356_v40, %v355_v41 }
  0x9b   : > { %v359_v45 = vadd.f32 %v358_v42, %v357_v43 }
  0x9d   : > { %v361_v47 = vadd.f32 %v360_v44, %v359_v45 }
  0x9f   : > { %362 = vadd.xlane.f32.xlu0 %v361_v47 }
  0xa3   : > { %381 = vadd.xlane.f32.xlu0 %v953_v6 }
  0xf6   : > { %v399_v46 = vpop.xlane.xlu1 %398 }
  0xf7   : > { %v400_v12 = vrot.slane %v399_v46, 4 }
  0xf9   : > { %v401_v49 = vadd.f32 %v400_v12, %v399_v46 }
  0xfb   : > { %v402_v51 = vrot.slane %v401_v49, 2 }
  0xfd   : > { %v403_v56 = vadd.f32 %v402_v51, %v401_v49 }
  0xff   : > { %v404_v60 = vrot.slane %v403_v56, 1 }
 0x101   : > { %v405_v0 = vadd.f32 %v404_v60, %v403_v56 }
 0x12c   : > { %v363_v48 = vpop.xlane.xlu0 %362 }
 0x12d   : > { %v364_v50 = vrot.slane %v363_v48, 4 }
 0x12f   : > { %v365_v52 = vadd.f32 %v364_v50, %v363_v48 }
 0x130   : > { %v382_v53 = vpop.xlane.xlu0 %381 }
 0x131   : > { %v366_v54 = vrot.slane %v365_v52, 2  ;;  %v383_v55 = vrot.slane %v382_v53, 4 }
 0x133   : > { %v384_v57 = vadd.f32 %v383_v55, %v382_v53  ;;  %v367_v58 = vadd.f32 %v366_v54, %v365_v52 }
 0x135   : > { %v385_v6 = vrot.slane %v384_v57, 2  ;;  %v368_v59 = vrot.slane %v367_v58, 1 }
 0x137   : > { %v386_v61 = vadd.f32 %v385_v6, %v384_v57  ;;  %v369_v62 = vadd.f32 %v368_v59, %v367_v58 }
 0x139   : > { %528 = vpush %v369_v62  ;;  %v387_v63 = vrot.slane %v386_v61, 1 }
 0x13b   : > { %v388_v1 = vadd.f32 %v387_v63, %v386_v61 }
 0x13d   : > { %530 = vpush %v388_v1 }
 0x13e   : > { %532 = vpush %v405_v0 }
 0x16a   : > { %s529_s19 = spop %528 }
 0x16b   : > { %v371_v3 = vstv %s529_s19 }
 0x16c   : > { %v372_v4 = vadd.f32 %v371_v3, %v265_v2 }
 0x16e   : > { %373 = vst [vmem:[%s1065_s17] sm:$0x1] %v372_v4  ;;  %s531_s21 = spop %530 }
 0x16f   : > { %s390_s6 = smul.f32 0.001953125, %s531_s21  ;;  %s533_s7 = spop %532 }
 0x170   : > { %s407_s4 = smul.f32 0.001953125, %s533_s7 }
 0x171   : > { %v391_v7 = vstv %s390_s6 }
 0x172   : > { %v408_v10 = vstv %s407_s4 }
 0x175   : > { %v377_v5 = vld [vmem:[%s1065_s17] sm:$0x1] }
 0x176   : > { %v392_v8 = vadd.f32 %v391_v7, %v377_v5 }
 0x178   : > { %393 = vst [vmem:[%s1065_s17] sm:$0x1] %v392_v8 }
 0x17f   : > { %v394_v9 = vld [vmem:[%s1065_s17] sm:$0x1] }
 0x180   : > { %v409_v13 = vadd.f32 %v408_v10, %v394_v9 }
 0x182   : > { %410 = vst [vmem:[%s1065_s17] sm:$0x1] %v409_v13 }
 0x183   : > { %681 = shalt.err (!%p678_p5)
}
 0x184   : > { %s682_s16 = scalar_lea.hbm %s1078_s23, 16  ;;  %s686_s17 = scalar_lea.hbm %s1130_s2, 32 }
 0x185   : > { %p683_p9 = scmp.ne.s32.totalorder %s1078_s23, %s682_s16  ;;  %p687_p3 = scmp.lt.u32.totalorder %s1078_s23, %s1130_s2 }
 0x186   : > { %p688_p7 = scmp.lt.u32.totalorder %s686_s17, %s682_s16  ;;  %p690_p4 = scmp.lt.u32.totalorder %s682_s16, %s1078_s23 }
 0x187   : > { %p684_p1 = pnand %p683_p9, %p876_p10 }
 0x188   : > { %p689_p13 = por %p688_p7, %p687_p3 }
 0x189   : > { %p685_p2 = pneg %p684_p1 }
 0x18a   : > { %p691_p6 = por %p690_p4, %p689_p13 }
 0x18c   : > { %p692_p8 = pnand %p691_p6, %p685_p2 }
 0x18e   : > { %695 = shalt.err (!%p692_p8)
}
 0x18f   : > { %540 = dma.vmem_to_hbm [thread:$0]  (%p876_p10), %s1080_s15, 16, %s1078_s23, %s412_s3  }
 0x190 PF: > { %s436_s6 = sand.u32 1, %s734_s9   ;;  %p1148_p12 = scmp.ne.s32.totalorder %s1138_s20, 0 }
 0x191   : > { %p1149_p11 = scmp.ge.s32.totalorder %s754_s14, 2  ;;  %s437_s7 = scalar_lea.sflag [#allocation4], %s436_s6 }
 0x193   : > { %p551_p0 = pnand %p1149_p11, %p1148_p12 }
 0x195   : > { %729 = dma.done.wait (!%p551_p0), %s437_s7, 16  }
 0x196   : > { %731 = vsyncadd (!%p551_p0), %s437_s7, 4294967280  ;;  %s19_s14 = sadd.s32 1, %s754_s14   ;;  %s1150_s9 = smov %s738_s10 }
 0x197   : > { %p16_p5 = scmp.ge.s32.totalorder %s19_s14, 4   ;;  %s1151_s10 = smov %s742_s11 }
 0x198   : > { %s1152_s11 = smov %s885_s28  ;;  %s1153_s12 = smov %s750_s13 }
 0x199   : > { %s1154_s13 = smov %s1156_s25  ;;  %18 = sbr.rel (!%p16_p5) target bundleno = 7 (0x7), region = 86 }
 0x1a0   :  { %441 = vsyncpa [#allocation3], 1 }
 0x1a1   :  { %443 = vsyncpa [#allocation3 + $0x1], 1 }
 0x1a2   :  { %444 = vsyncpa [#allocation6], 1 }
 0x1a3   :  { %446 = vsyncpa [#allocation6 + $0x1], 1 }
 0x1a4   :  { %447 = vsyncpa [#allocation4], 1 }
 0x1a5   :  { %449 = vsyncpa [#allocation4 + $0x1], 1 }

</bundles_post_ra>
